<compile_context>
chip_gen: v7x
topology: tpu7x:2x2x1
jax: 0.10.0
libtpu: 0.0.40
codegen_flags: <defaults>
</compile_context>

<pallas_src>
import functools

import jax
import jax.numpy as jnp
import numpy as np
from jax.experimental import pallas as pl
from jax.experimental.pallas import tpu as pltpu

_LANE = 128


def cx_kernel(mean_col_ref, t_ref, i_ref, out_ref, cxmax_ref, *, sigma, eps):
    # mean_col_ref: (C, 1)          t_ref: (1, P, C)  pre-normalized target patches
    # i_ref: (1, C, TQ)             out_ref: (1, 1, P, 1)
    # cxmax_ref: (P, 128)           running max of CX over Q (lane-deferred)
    q = pl.program_id(2)

    @pl.when(q == 0)
    def _init():
        # cx is a softmax output (> 0), so 0 is a safe identity for the running max.
        cxmax_ref[...] = jnp.zeros_like(cxmax_ref)

    # Center by the cross-batch target mean + L2-normalize this tile of inference
    # locations over channels (f32 in-register, EUP rsqrt).
    fi = i_ref[0].astype(jnp.float32) - mean_col_ref[...]                     # (C, TQ)
    inv_norm = jax.lax.rsqrt(
        jnp.maximum(jnp.sum(fi * fi, axis=0, keepdims=True), 1e-12))
    fi = (fi * inv_norm).astype(t_ref.dtype)

    # Cosine similarity of every target patch vs every inference location in the tile
    # (== the per-image 1x1 conv in the PyTorch code).  (P,C) @ (C,TQ) on the MXU.
    dist = jnp.dot(t_ref[0], fi, preferred_element_type=jnp.float32)          # (P, TQ)

    # Fused CX softmax over target patches (axis 0).  Original chain:
    #   raw = (1-dist)/2; rel = raw/(dmin+eps); w = exp((b-rel)/sigma); cx = w/sum_p(w)
    # All per-column constants cancel in w/sum(w), leaving a per-column softmax of
    # alpha_q * dist with dmin_q = (1-dmax_q)/2; `b` cancels exactly.
    dmax = jnp.max(dist, axis=0, keepdims=True)                               # (1, TQ)
    alpha = 1.0 / (sigma * (1.0 - dmax + 2.0 * eps))                          # exact: scales an exponent
    w = jnp.exp((dist - dmax) * alpha)                                        # exponent <= 0
    inv_sum = pl.reciprocal(jnp.sum(w, axis=0, keepdims=True), approx=True)   # EUP
    cx = w * inv_sum                                                          # (P, TQ)

    # Deferred cross-lane reduction: fold the tile into the (P, 128) running max with
    # lane-aligned static slices (pure VALU maxes); the single 128 -> 1 cross-lane
    # reduce happens once per (batch, split) in the finalize, not once per tile.
    m = cx[:, 0:_LANE]
    for j in range(1, cx.shape[1] // _LANE):
        m = jnp.maximum(m, cx[:, j * _LANE:(j + 1) * _LANE])
    cxmax_ref[...] = jnp.maximum(cxmax_ref[...], m)

    @pl.when(q == pl.num_programs(2) - 1)
    def _finalize():
        cxm = jnp.max(cxmax_ref[...], axis=1, keepdims=True)                  # (P, 1)
        out_ref[...] = cxm.reshape(out_ref.shape)


def _vmem_capacity_bytes():
    try:
        return int(pltpu.get_tpu_info().vmem_capacity_bytes)
    except Exception:
        return 64 * 1024 * 1024  # conservative (v7x-sized) fallback


def cx_loss(featureT, featureI, sigma=0.1, b=1.0, q_tile=1024, q_splits=None):
    """Pallas implementation of CXLoss.forward(featureT, featureI) -> scalar.

    `b` cancels exactly inside the CX normalization (w / sum(w)), so the loss does not
    depend on it; kept only for API parity with the PyTorch module.
    """
    del b
    N, C, Ht, Wt = featureT.shape
    Ni, Ci, Hi, Wi = featureI.shape
    assert Ni == N and Ci == C
    P = Ht * Wt
    Q = Hi * Wi

    # bf16 inputs stay bf16 through DMA + MXU (f32 accumulation).  f32 inputs are kept
    # f32 for the MXU (no accuracy-risky downcast near dmax -> 1).
    mxu_dtype = jnp.bfloat16 if featureT.dtype == jnp.bfloat16 else jnp.float32

    # Cross-batch / cross-spatial target mean spans the grid axis -> plain-JAX glue.
    fT = featureT.astype(jnp.float32)
    meanT = jnp.mean(fT, axis=(0, 2, 3))                                      # (C,)
    mean_col = meanT.reshape(C, 1)

    # Target centering + channelwise L2 normalization done ONCE in the wrapper; the
    # pre-normalized, pre-transposed LHS goes straight to the MXU (no tnorm scratch,
    # no per-batch-element normalization burst inside the kernel).
    fT = fT - meanT[None, :, None, None]
    fT = fT * jax.lax.rsqrt(jnp.maximum(jnp.sum(fT * fT, axis=1, keepdims=True), 1e-12))
    t_npc = jnp.transpose(fT.reshape(N, C, P), (0, 2, 1)).astype(mxu_dtype)   # (N, P, C)

    i_ncq = featureI.reshape(N, C, Q)                                         # (N, C, Q)

    # ---- generation-aware Q tiling / VMEM budget ------------------------------------
    cap = _vmem_capacity_bytes()                         # 128 MiB v5e/v6e, 64 MiB v7x
    budget = min(cap - 8 * 2**20, 96 * 2**20)            # ~96 MiB v5e/v6e, ~56 MiB v7x
    b_in = jnp.dtype(featureI.dtype).itemsize
    b_t = jnp.dtype(mxu_dtype).itemsize
    fixed = 2 * P * C * b_t + P * _LANE * 4              # double-buffered target + cxmax
    per_col = 2 * C * b_in + C * b_t + 4 * P * 4         # i dbl-buffer + fi + dist/w/cx/m
    avail = budget - fixed - 4 * 2**20
    tq = max(_LANE, min(int(q_tile), int(avail // per_col)) // _LANE * _LANE)

    q128 = ((Q + _LANE - 1) // _LANE) * _LANE            # lane-dense even when Q <= tq
    tq = min(tq, q128)
    n_q = (q128 + tq - 1) // tq

    # Optional Q split so both v7x TensorCores are busy when the batch alone cannot
    # fill them (harmless / negligible overhead on single-TC chips).
    if q_splits is None:
        q_splits = 2 if (N == 1 and n_q >= 2) else 1
    S = int(q_splits)
    n_q = ((n_q + S - 1) // S) * S
    n_q_per = n_q // S

    Qp = n_q * tq
    if Qp != Q:
        # "edge" padding replicates the last real column; a duplicated column has an
        # identical cx column, so the max over Q (and the loss) is unchanged.
        i_ncq = jnp.pad(i_ncq, ((0, 0), (0, 0), (0, Qp - Q)), mode="edge")

    est = fixed + tq * per_col + 4 * 2**20
    vmem_limit = int(min(cap - 4 * 2**20, max(est + 8 * 2**20, 32 * 2**20)))

    kernel = functools.partial(cx_kernel, sigma=float(sigma), eps=1e-5)
    cxmax = pl.pallas_call(
        kernel,
        out_shape=jax.ShapeDtypeStruct((N, S, P, 1), jnp.float32),
        grid_spec=pltpu.PrefetchScalarGridSpec(
            num_scalar_prefetch=0,
            grid=(N, S, n_q_per),
            in_specs=[
                pl.BlockSpec((C, 1), lambda n, s, q: (0, 0)),
                pl.BlockSpec((1, P, C), lambda n, s, q: (n, 0, 0)),       # resident across s, q
                pl.BlockSpec((1, C, tq), lambda n, s, q: (n, 0, s * n_q_per + q)),
            ],
            out_specs=pl.BlockSpec((1, 1, P, 1), lambda n, s, q: (n, s, 0, 0)),
            scratch_shapes=[
                pltpu.VMEM((P, _LANE), jnp.float32),     # deferred running max over Q
            ],
        ),
        compiler_params=pltpu.CompilerParams(
            dimension_semantics=("parallel", "parallel", "arbitrary"),
            vmem_limit_bytes=vmem_limit,
        ),
    )(mean_col, t_npc, i_ncq)

    cx_max = jnp.max(cxmax[..., 0], axis=1)              # combine Q splits -> (N, P)
    return jnp.mean(-jnp.log(jnp.mean(cx_max, axis=1)))


def cx_loss_ref(featureT, featureI, sigma=0.1, b=1.0):
    """Pure-JAX reference mirroring the PyTorch module exactly."""
    featureT = featureT.astype(jnp.float32)
    featureI = featureI.astype(jnp.float32)
    meanT = jnp.mean(featureT, axis=(0, 2, 3), keepdims=True)
    fI = featureI - meanT
    fT = featureT - meanT
    fI = fI / jnp.sqrt(jnp.sum(fI * fI, axis=1, keepdims=True))
    fT = fT / jnp.sqrt(jnp.sum(fT * fT, axis=1, keepdims=True))
    N, C, H, W = fT.shape
    P = H * W
    tpat = fT.reshape(N, C, P)
    ipat = fI.reshape(N, C, fI.shape[2] * fI.shape[3])
    dist = jnp.einsum('ncp,ncq->npq', tpat, ipat)            # (N, P, Q)
    raw = (1.0 - dist) / 2.0
    dmin = jnp.min(raw, axis=1, keepdims=True)
    rel = raw / (dmin + 1e-5)
    w = jnp.exp((b - rel) / sigma)
    cx = w / jnp.sum(w, axis=1, keepdims=True)
    cx_max = jnp.max(cx, axis=2)                             # (N, P)
    return jnp.mean(-jnp.log(jnp.mean(cx_max, axis=1)))


if __name__ == "__main__":
    key = jax.random.PRNGKey(0)
    k1, k2, k3, k4 = jax.random.split(key, 4)

    # Test 1: small NCHW features, batch > 1 (single Q tile, no split).
    N, C, H, W = 2, 8, 8, 8
    featureT = jax.random.normal(k1, (N, C, H, W), dtype=jnp.float32)
    featureI = jax.random.normal(k2, (N, C, H, W), dtype=jnp.float32)
    out = cx_loss(featureT, featureI)
    jax.block_until_ready(out)
    ref = cx_loss_ref(featureT, featureI)
    # Tolerance deliberately loosened vs the f32-exact reference: the approx EUP
    # reciprocal and the reassociated (fused) softmax change rounding at ~1e-3;
    # formula errors would show up at O(0.1-1).
    np.testing.assert_allclose(np.asarray(out), np.asarray(ref), rtol=2e-3, atol=1e-3)

    # Test 2: N == 1 with a forced small q_tile so the Q-split (S=2) and multi-tile /
    # edge-padded paths are exercised.
    featureT2 = jax.random.normal(k3, (1, 8, 12, 12), dtype=jnp.float32)
    featureI2 = jax.random.normal(k4, (1, 8, 12, 12), dtype=jnp.float32)
    out2 = cx_loss(featureT2, featureI2, q_tile=128)
    jax.block_until_ready(out2)
    ref2 = cx_loss_ref(featureT2, featureI2)
    np.testing.assert_allclose(np.asarray(out2), np.asarray(ref2), rtol=2e-3, atol=1e-3)

    print("KERNEL_OK")
</pallas_src>

<mosaic_0001>
module attributes {stable_mosaic.version = 11 : i64} {
  func.func @cx_kernel(%arg0: i32, %arg1: i32, %arg2: i32, %arg3: memref<8x1xf32, #tpu.memory_space<vmem>>, %arg4: memref<1x64x8xf32, #tpu.memory_space<vmem>>, %arg5: memref<1x8x128xf32, #tpu.memory_space<vmem>>, %arg6: memref<1x1x64x1xf32, #tpu.memory_space<vmem>>, %arg7: memref<64x128xf32, #tpu.memory_space<vmem>>) attributes {dimension_semantics = [#tpu.dimension_semantics<parallel>, #tpu.dimension_semantics<parallel>, #tpu.dimension_semantics<arbitrary>], iteration_bounds = array<i64: 2, 1, 1>, scalar_prefetch = 0 : i64, scratch_operands = 1 : i64, tpu.core_type = #tpu.core_type<tc>, window_params = [{pipeline_mode = #tpu.pipeline_mode<synchronous>, transform_indices = @transform_0, window_bounds = array<i64: 8, 1>}, {transform_indices = @transform_1, window_bounds = array<i64: 1, 64, 8>}, {transform_indices = @transform_2, window_bounds = array<i64: 1, 8, 128>}, {transform_indices = @transform_3, window_bounds = array<i64: 1, 1, 64, 1>}]} {
    %c0_i32 = arith.constant 0 : i32
    %0 = arith.cmpi eq, %arg2, %c0_i32 : i32
    %1 = arith.extui %0 : i1 to i32
    %c0_i32_0 = arith.constant 0 : i32
    %2 = arith.cmpi ne, %1, %c0_i32_0 : i32
    scf.if %2 {
      %cst_22 = arith.constant 0.000000e+00 : f32
      %45 = vector.broadcast %cst_22 : f32 to vector<64x128xf32>
      %c0_23 = arith.constant 0 : index
      %c0_24 = arith.constant 0 : index
      %46 = vector.load %arg7[%c0_23, %c0_24] : memref<64x128xf32, #tpu.memory_space<vmem>>, vector<64x128xf32>
      tpu.vector_store %arg7[%c0_23, %c0_24], %45 {strides = array<i32>} : memref<64x128xf32, #tpu.memory_space<vmem>>, vector<64x128xf32>,
    } else {
    }
    %c0 = arith.constant 0 : index
    %c0_1 = arith.constant 0 : index
    %c0_2 = arith.constant 0 : index
    %3 = vector.load %arg5[%c0, %c0_1, %c0_2] : memref<1x8x128xf32, #tpu.memory_space<vmem>>, vector<1x8x128xf32>
    %4 = vector.shape_cast %3 : vector<1x8x128xf32> to vector<8x128xf32>
    %c0_3 = arith.constant 0 : index
    %c0_4 = arith.constant 0 : index
    %5 = vector.load %arg3[%c0_3, %c0_4] : memref<8x1xf32, #tpu.memory_space<vmem>>, vector<8x1xf32>
    %6 = vector.broadcast %5 : vector<8x1xf32> to vector<8x128xf32>
    %7 = arith.subf %4, %6 : vector<8x128xf32>
    %8 = arith.mulf %7, %7 : vector<8x128xf32>
    %cst = arith.constant dense<0.000000e+00> : vector<128xf32>
    %9 = vector.multi_reduction <add>, %8, %cst [0] : vector<8x128xf32> to vector<128xf32>
    %10 = vector.shape_cast %9 : vector<128xf32> to vector<1x128xf32>
    %cst_5 = arith.constant 9.99999996E-13 : f32
    %11 = vector.broadcast %cst_5 : f32 to vector<1x128xf32>
    %12 = arith.maximumf %10, %11 : vector<1x128xf32>
    %13 = math.rsqrt %12 : vector<1x128xf32>
    %14 = vector.broadcast %13 : vector<1x128xf32> to vector<8x128xf32>
    %15 = arith.mulf %7, %14 : vector<8x128xf32>
    %c0_6 = arith.constant 0 : index
    %c0_7 = arith.constant 0 : index
    %c0_8 = arith.constant 0 : index
    %16 = vector.load %arg4[%c0_6, %c0_7, %c0_8] : memref<1x64x8xf32, #tpu.memory_space<vmem>>, vector<1x64x8xf32>
    %17 = vector.shape_cast %16 : vector<1x64x8xf32> to vector<64x8xf32>
    %cst_9 = arith.constant dense<0.000000e+00> : vector<64x128xf32>
    %18 = tpu.matmul %17, %15, %cst_9 {dimension_numbers = #tpu.dot_dimension_numbers<[1], [0], [0], [1], [0, 0, 1, 1], [], []>} : vector<64x8xf32>, vector<8x128xf32>, vector<64x128xf32> -> vector<64x128xf32>
    %cst_10 = arith.constant dense<0xFF800000> : vector<128xf32>
    %19 = vector.multi_reduction <maximumf>, %18, %cst_10 [0] : vector<64x128xf32> to vector<128xf32>
    %20 = vector.shape_cast %19 : vector<128xf32> to vector<1x128xf32>
    %cst_11 = arith.constant 1.000000e+00 : f32
    %21 = vector.broadcast %cst_11 : f32 to vector<1x128xf32>
    %22 = arith.subf %21, %20 : vector<1x128xf32>
    %cst_12 = arith.constant 2.000000e-05 : f32
    %23 = vector.broadcast %cst_12 : f32 to vector<1x128xf32>
    %24 = arith.addf %22, %23 : vector<1x128xf32>
    %cst_13 = arith.constant 1.000000e-01 : f32
    %25 = vector.broadcast %cst_13 : f32 to vector<1x128xf32>
    %26 = arith.mulf %25, %24 : vector<1x128xf32>
    %cst_14 = arith.constant 1.000000e+00 : f32
    %27 = vector.broadcast %cst_14 : f32 to vector<1x128xf32>
    %28 = arith.divf %27, %26 : vector<1x128xf32>
    %29 = vector.broadcast %20 : vector<1x128xf32> to vector<64x128xf32>
    %30 = arith.subf %18, %29 : vector<64x128xf32>
    %31 = vector.broadcast %28 : vector<1x128xf32> to vector<64x128xf32>
    %32 = arith.mulf %30, %31 : vector<64x128xf32>
    %33 = math.exp %32 : vector<64x128xf32>
    %cst_15 = arith.constant dense<0.000000e+00> : vector<128xf32>
    %34 = vector.multi_reduction <add>, %33, %cst_15 [0] : vector<64x128xf32> to vector<128xf32>
    %35 = vector.shape_cast %34 : vector<128xf32> to vector<1x128xf32>
    %36 = tpu.reciprocal %35 {approx = true} : vector<1x128xf32> -> vector<1x128xf32>
    %37 = vector.broadcast %36 : vector<1x128xf32> to vector<64x128xf32>
    %38 = arith.mulf %33, %37 : vector<64x128xf32>
    %c0_16 = arith.constant 0 : index
    %c0_17 = arith.constant 0 : index
    %39 = vector.load %arg7[%c0_16, %c0_17] : memref<64x128xf32, #tpu.memory_space<vmem>>, vector<64x128xf32>
    %40 = arith.maximumf %39, %38 : vector<64x128xf32>
    %c0_18 = arith.constant 0 : index
    %c0_19 = arith.constant 0 : index
    %41 = vector.load %arg7[%c0_18, %c0_19] : memref<64x128xf32, #tpu.memory_space<vmem>>, vector<64x128xf32>
    tpu.vector_store %arg7[%c0_18, %c0_19], %40 {strides = array<i32>} : memref<64x128xf32, #tpu.memory_space<vmem>>, vector<64x128xf32>,
    %c0_i32_20 = arith.constant 0 : i32
    %42 = arith.cmpi eq, %arg2, %c0_i32_20 : i32
    %43 = arith.extui %42 : i1 to i32
    %c0_i32_21 = arith.constant 0 : i32
    %44 = arith.cmpi ne, %43, %c0_i32_21 : i32
    scf.if %44 {
      %c0_22 = arith.constant 0 : index
      %c0_23 = arith.constant 0 : index
      %45 = vector.load %arg7[%c0_22, %c0_23] : memref<64x128xf32, #tpu.memory_space<vmem>>, vector<64x128xf32>
      %cst_24 = arith.constant dense<0xFF800000> : vector<64xf32>
      %46 = vector.multi_reduction <maximumf>, %45, %cst_24 [1] : vector<64x128xf32> to vector<64xf32>
      %47 = vector.shape_cast %46 : vector<64xf32> to vector<64x1xf32>
      %48 = vector.shape_cast %47 : vector<64x1xf32> to vector<1x1x64x1xf32>
      %c0_25 = arith.constant 0 : index
      %c0_26 = arith.constant 0 : index
      %c0_27 = arith.constant 0 : index
      %c0_28 = arith.constant 0 : index
      %49 = vector.load %arg6[%c0_25, %c0_26, %c0_27, %c0_28] : memref<1x1x64x1xf32, #tpu.memory_space<vmem>>, vector<1x1x64x1xf32>
      tpu.vector_store %arg6[%c0_25, %c0_26, %c0_27, %c0_28], %48 {strides = array<i32>} : memref<1x1x64x1xf32, #tpu.memory_space<vmem>>, vector<1x1x64x1xf32>,
    } else {
    }
    return
  }
  func.func @transform_0(%arg0: i32, %arg1: i32, %arg2: i32) -> (i32, i32) {
    %c0_i32 = arith.constant 0 : i32
    %c0_i32_0 = arith.constant 0 : i32
    %c0_i32_1 = arith.constant 0 : i32
    return %c0_i32, %c0_i32_0 : i32, i32
  }
  func.func @transform_1(%arg0: i32, %arg1: i32, %arg2: i32) -> (i32, i32, i32) {
    %c0_i32 = arith.constant 0 : i32
    %c0_i32_0 = arith.constant 0 : i32
    %c0_i32_1 = arith.constant 0 : i32
    return %arg0, %c0_i32, %c0_i32_0 : i32, i32, i32
  }
  func.func @transform_2(%arg0: i32, %arg1: i32, %arg2: i32) -> (i32, i32, i32) {
    %c1_i32 = arith.constant 1 : i32
    %0 = arith.muli %arg1, %c1_i32 : i32
    %1 = arith.addi %0, %arg2 : i32
    %c0_i32 = arith.constant 0 : i32
    %c0_i32_0 = arith.constant 0 : i32
    return %arg0, %c0_i32, %1 : i32, i32, i32
  }
  func.func @transform_3(%arg0: i32, %arg1: i32, %arg2: i32) -> (i32, i32, i32, i32) {
    %c0_i32 = arith.constant 0 : i32
    %c0_i32_0 = arith.constant 0 : i32
    %c0_i32_1 = arith.constant 0 : i32
    return %arg0, %arg1, %c0_i32, %c0_i32_0 : i32, i32, i32, i32
  }
}

</mosaic_0001>

<bundles_post_ra>
// kernel: tpu_custom_call.1
= control target key start
LH: loop header
LB: loop body
LE: loop exit
PB: predicated region body
PF: predicated region fallthrough
CT: control target
= control target key end

     0   :  { %s776_s12 = smov 0   ;;  %s778_s13 = smov 0   ;;  %s849_s0 = inlined_call_operand.vmem [shape: f32[8,1], index: 0, kind: input, shape index: {}]   ;;  %s850_s1 = inlined_call_operand.vmem [shape: f32[2,64,8], index: 1, kind: input, shape index: {}]   ;;  %s851_s2 = inlined_call_operand.vmem [shape: f32[2,8,128], index: 2, kind: input, shape index: {}]   ;;  %s852_s3 = inlined_call_operand.vmem [shape: f32[2,1,64,1], index: 3, kind: output, shape index: {}]  }
   0x1   :  { %s780_s14 = smov 0  }
   0x2 LB: > { %s32_s15 = sadd.s32 1, %s749_s13  ;;  %p640_p0 = scmp.ge.s32.totalorder %s753_s14, 1  ;;  %s753_s14 = sphi %s780_s14, %s13_s14   ;;  %s749_s13 = sphi %s778_s13, %s854_s13   ;;  %s745_s12 = sphi %s776_s12, %s853_s12  }
   0x3   : > { %p34_p1 = scmp.ge.s32.totalorder %s32_s15, 2  ;;  %p176_p2 = scmp.lt.s32.totalorder %s753_s14, 3 }
   0x5   : > { %s856_s15 = smov (%p34_p1, %s32_s15), 0  ;;  %p177_p3 = pnand %p640_p0, %p176_p2 }
   0x6   : > { %v248_v0 = vld [vmem:[%s849_s0] sm:$0xff] (!%p177_p3)  ;;  %v755_v1 = vmov (!%p177_p3), 0   ;;  %p212_p4 = scmp.lt.s32.totalorder (!%p177_p3), %s745_s12, 1  ;;  %vm273_vm0 = vcmask (!%p177_p3), 64512   ;;  %vm526_vm1 = vcmask (!%p177_p3), 7168  }
   0x7   : > { %180 = sbr.rel (%p177_p3) target bundleno = 645 (0x285), region = 32  ;;  %708 = vset.pattern.permute.xlu0 (!%p177_p3), %v755_v1 }
   0x8   : > { %251 = vperm.xlu0 (!%p177_p3), %708, %v248_v0  }
   0xe   : > { %s858_s12 = smov (!%p212_p4, %s745_s12), 1 }
   0xf   : > { %s656_s18 = sshll.u32 %s858_s12, 6  ;;  %s643_s22 = sshll.u32 %s858_s12, 3 }
  0x10   : > { %s805_s21 = scalar_lea.vmem %s850_s1, %s656_s18  ;;  %s224_s25 = scalar_lea.vmem %s851_s2, %s643_s22 }
  0x11   : > { %v265_v2 = vld [vmem:[%s805_s21] sm:$0xff]  ;;  %v266_v17 = vld [vmem:[%s805_s21 + $0x8] sm:$0xff]  ;;  %v267_v19 = vld [vmem:[%s805_s21 + $0x10] sm:$0xff]  ;;  %s234_s28 = scalar_lea.vmem %s852_s3, %s656_s18 }
  0x12   : > { %v269_v3 = vld [vmem:[%s805_s21 + $0x20] sm:$0xff]  ;;  %669 = vmatprep.mubr.msk.f32.mxu0 %vm273_vm0, %v265_v2  ;;  %v270_v18 = vld [vmem:[%s805_s21 + $0x28] sm:$0xff]  ;;  %v271_v20 = vld [vmem:[%s805_s21 + $0x30] sm:$0xff] }
  0x13   : > { %675 = vmatprep.mubr.msk.f32.mxu1 %vm273_vm0, %v269_v3  ;;  %v247_v4 = vld [vmem:[%s224_s25] sm:$0xff]  ;;  %v268_v21 = vld [vmem:[%s805_s21 + $0x18] sm:$0xff] }
  0x14   : > { %v272_v22 = vld [vmem:[%s805_s21 + $0x38] sm:$0xff] }
  0x87   : > { %v252_v5 = vpop.permute.xlu0 %251 }
  0x88   : > { %v254_v6 = vsub.f32 %v247_v4, %v252_v5 }
  0x8a   : > { %v255_v7 = vmul.f32 %v254_v6, %v254_v6 }
  0x8c   : > { %v256_v8 = vrot.slane %v255_v7, 4 }
  0x8e   : > { %v257_v9 = vadd.f32 %v256_v8, %v255_v7 }
  0x90   : > { %v258_v10 = vrot.slane %v257_v9, 2 }
  0x92   : > { %v259_v11 = vadd.f32 %v258_v10, %v257_v9 }
  0x94   : > { %v260_v12 = vrot.slane %v259_v11, 1 }
  0x96   : > { %v261_v13 = vadd.f32 %v260_v12, %v259_v11 }
  0x98   : > { %v262_v14 = vmax.f32 %v261_v13, 1e-12 }
  0x9a   : > { %709 = vrsqrt.f32 %v262_v14 }
  0xa4   : > { %v710_v15 = vpop.eup %709 }
  0xa5   : > { %v264_v16 = vmul.f32 %v710_v15, %v254_v6 }
  0xa7   : > { %667 = vmatprep.subr.mxu0 %v264_v16  ;;  %681 = vmatprep.subr.mxu1 %v264_v16 }
  0xa8   : > { %668 = vmatpush3.msra.mxu0 %v264_v16  ;;  %682 = vmatpush3.msra.mxu1 %v264_v16 }
  0xa9   : > { %670 = vmatmul.mubr.msk.f32.vlgmr.msra.gmra.mrb[0].mxu0 %vm273_vm0, %v266_v17  ;;  %676 = vmatmul.mubr.msk.f32.vlgmr.msra.gmra.mrb[0].mxu1 %vm273_vm0, %v270_v18 }
  0xaa   : > { %672 = vmatprep.mubr.msk.f32.mxu0 %vm273_vm0, %v267_v19  ;;  %678 = vmatprep.mubr.msk.f32.mxu1 %vm273_vm0, %v271_v20 }
  0xad   : > { %673 = vmatmul.mubr.msk.f32.gmra.mrb[2].mxu0 %vm273_vm0, %v268_v21  ;;  %679 = vmatmul.mubr.msk.f32.gmra.mrb[2].mxu1 %vm273_vm0, %v272_v22 }
 0x17c   : > { %v671_v23 = vpop.f32.mrb[0].mxu0  ;;  %v677_v24 = vpop.f32.mrb[0].mxu1 }
 0x17d   : > { %v404_v25 = vmax.f32 %v671_v23, %v677_v24  ;;  %v364_v26 = vpop.f32.mrb[1].mxu0  ;;  %v384_v27 = vpop.f32.mrb[1].mxu1 }
 0x17e   : > { %v403_v28 = vmax.f32 %v364_v26, %v384_v27 }
 0x180   : > { %v407_v29 = vmax.f32 %v403_v28, %v404_v25  ;;  %v674_v30 = vpop.f32.mrb[2].mxu0  ;;  %v680_v31 = vpop.f32.mrb[2].mxu1 }
 0x181   : > { %v406_v32 = vmax.f32 %v674_v30, %v680_v31  ;;  %v374_v33 = vpop.f32.mrb[3].mxu0  ;;  %v394_v34 = vpop.f32.mrb[3].mxu1 }
 0x182   : > { %v405_v35 = vmax.f32 %v374_v33, %v394_v34 }
 0x184   : > { %v408_v36 = vmax.f32 %v405_v35, %v406_v32 }
 0x186   : > { %v409_v37 = vmax.f32 %v407_v29, %v408_v36 }
 0x188   : > { %v410_v38 = vrot.slane %v409_v37, 4 }
 0x18a   : > { %v411_v39 = vmax.f32 %v409_v37, %v410_v38 }
 0x18c   : > { %v412_v40 = vrot.slane %v411_v39, 2 }
 0x18e   : > { %v413_v41 = vmax.f32 %v411_v39, %v412_v40 }
 0x190   : > { %v414_v42 = vrot.slane %v413_v41, 1 }
 0x192   : > { %v415_v43 = vmax.f32 %v413_v41, %v414_v42 }
 0x194   : > { %v416_v44 = vsub.f32 1.0, %v415_v43  ;;  %v427_v45 = vsub.f32 %v394_v34, %v415_v43  ;;  %v421_v46 = vsub.f32 %v364_v26, %v415_v43  ;;  %v422_v47 = vsub.f32 %v671_v23, %v415_v43 }
 0x195   : > { %v423_v48 = vsub.f32 %v374_v33, %v415_v43  ;;  %v424_v49 = vsub.f32 %v674_v30, %v415_v43  ;;  %v425_v50 = vsub.f32 %v384_v27, %v415_v43  ;;  %v426_v51 = vsub.f32 %v677_v24, %v415_v43 }
 0x196   : > { %v417_v52 = vadd.f32 2e-05, %v416_v44  ;;  %v428_v53 = vsub.f32 %v680_v31, %v415_v43 }
 0x198   : > { %v418_v54 = vmul.f32 0.1, %v417_v52 }
 0x19a   : > { %711 = vrcp.f32 %v418_v54 }
 0x1a4   : > { %v712_v55 = vpop.eup %711 }
 0x1a5   : > { %v435_v56 = vmul.f32 %v712_v55, %v427_v45  ;;  %v429_v57 = vmul.f32 %v712_v55, %v421_v46  ;;  %v430_v58 = vmul.f32 %v712_v55, %v422_v47  ;;  %v431_v59 = vmul.f32 %v712_v55, %v423_v48 }
 0x1a6   : > { %v432_v60 = vmul.f32 %v712_v55, %v424_v49  ;;  %v433_v61 = vmul.f32 %v712_v55, %v425_v50  ;;  %v434_v62 = vmul.f32 %v712_v55, %v426_v51  ;;  %v436_v63 = vmul.f32 %v712_v55, %v428_v53 }
 0x1a7   : > { %v437_v0 = vmul.f32 1.442695, %v429_v57  ;;  %v439_v1 = vmul.f32 1.442695, %v430_v58  ;;  %v441_v2 = vmul.f32 1.442695, %v431_v59 }
 0x1a8   : > { %v443_v3 = vmul.f32 1.442695, %v432_v60  ;;  %v445_v4 = vmul.f32 1.442695, %v433_v61  ;;  %v447_v5 = vmul.f32 1.442695, %v434_v62 }
 0x1a9   : > { %713 = vpow2.f32 %v437_v0  ;;  %v449_v6 = vmul.f32 1.442695, %v435_v56  ;;  %v451_v7 = vmul.f32 1.442695, %v436_v63 }
 0x1aa   : > { %715 = vpow2.f32 %v439_v1 }
 0x1ab   : > { %717 = vpow2.f32 %v441_v2 }
 0x1ac   : > { %719 = vpow2.f32 %v443_v3 }
 0x1ad   : > { %721 = vpow2.f32 %v445_v4 }
 0x1ae   : > { %723 = vpow2.f32 %v447_v5 }
 0x1af   : > { %725 = vpow2.f32 %v449_v6 }
 0x1b0   : > { %727 = vpow2.f32 %v451_v7 }
 0x1b3   : > { %v714_v8 = vpop.eup %713 }
 0x1b4   : > { %v716_v9 = vpop.eup %715 }
 0x1b5   : > { %v453_v10 = vadd.f32 %v716_v9, %v714_v8  ;;  %v718_v11 = vpop.eup %717 }
 0x1b6   : > { %v720_v13 = vpop.eup %719 }
 0x1b7   : > { %v454_v12 = vadd.f32 %v718_v11, %v453_v10  ;;  %v722_v15 = vpop.eup %721 }
 0x1b8   : > { %v724_v17 = vpop.eup %723 }
 0x1b9   : > { %v455_v14 = vadd.f32 %v720_v13, %v454_v12  ;;  %v726_v19 = vpop.eup %725 }
 0x1ba   : > { %v728_v21 = vpop.eup %727 }
 0x1bb   : > { %v456_v16 = vadd.f32 %v722_v15, %v455_v14 }
 0x1bd   : > { %v457_v18 = vadd.f32 %v724_v17, %v456_v16 }
 0x1bf   : > { %v458_v20 = vadd.f32 %v726_v19, %v457_v18 }
 0x1c1   : > { %v459_v22 = vadd.f32 %v728_v21, %v458_v20 }
 0x1c3   : > { %v460_v23 = vrot.slane %v459_v22, 4 }
 0x1c5   : > { %v461_v24 = vadd.f32 %v460_v23, %v459_v22 }
 0x1c7   : > { %v462_v25 = vrot.slane %v461_v24, 2 }
 0x1c9   : > { %v463_v26 = vadd.f32 %v462_v25, %v461_v24 }
 0x1cb   : > { %v464_v27 = vrot.slane %v463_v26, 1 }
 0x1cd   : > { %v465_v28 = vadd.f32 %v464_v27, %v463_v26 }
 0x1cf   : > { %729 = vrcp.f32 %v465_v28 }
 0x1d9   : > { %v730_v29 = vpop.eup %729 }
 0x1da   : > { %v468_v30 = vmul.f32 %v730_v29, %v716_v9  ;;  %v467_v31 = vmul.f32 %v730_v29, %v714_v8  ;;  %v469_v32 = vmul.f32 %v730_v29, %v718_v11  ;;  %v470_v33 = vmul.f32 %v730_v29, %v720_v13 }
 0x1db   : > { %v471_v34 = vmul.f32 %v730_v29, %v722_v15  ;;  %v472_v35 = vmul.f32 %v730_v29, %v724_v17  ;;  %v473_v36 = vmul.f32 %v730_v29, %v726_v19  ;;  %v474_v37 = vmul.f32 %v730_v29, %v728_v21 }
 0x1dc   : > { %v484_v38 = vmax.f32 %v468_v30, 0.0  ;;  %v483_v39 = vmax.f32 %v467_v31, 0.0  ;;  %v485_v40 = vmax.f32 %v469_v32, 0.0  ;;  %v486_v41 = vmax.f32 %v470_v33, 0.0 }
 0x1dd   : > { %v487_v42 = vmax.f32 %v471_v34, 0.0  ;;  %v488_v43 = vmax.f32 %v472_v35, 0.0  ;;  %v489_v44 = vmax.f32 %v473_v36, 0.0  ;;  %v490_v45 = vmax.f32 %v474_v37, 0.0 }
 0x1de   : > { %512 = vmax.xlane.f32.xlu1 %v484_v38  ;;  %510 = vmax.xlane.f32.xlu0 %v483_v39 }
 0x1e2   : > { %514 = vmax.xlane.f32.xlu1 %v485_v40 }
 0x1e6   : > { %516 = vmax.xlane.f32.xlu1 %v486_v41 }
 0x1ea   : > { %518 = vmax.xlane.f32.xlu1 %v487_v42 }
 0x1ee   : > { %520 = vmax.xlane.f32.xlu1 %v488_v43 }
 0x1f2   : > { %522 = vmax.xlane.f32.xlu1 %v489_v44 }
 0x1f6   : > { %524 = vmax.xlane.f32.xlu1 %v490_v45 }
 0x26b   : > { %v513_v46 = vpop.xlane.xlu1 %512  ;;  %v511_v47 = vpop.xlane.xlu0 %510 }
 0x26c   : > { %528 = vst.msk [vmem:[%s234_s28 + $0x8] sm:$0xff] %vm526_vm1, %v513_v46  ;;  %527 = vst.msk [vmem:[%s234_s28] sm:$0xff] %vm526_vm1, %v511_v47 }
 0x26f   : > { %v515_v48 = vpop.xlane.xlu1 %514 }
 0x270   : > { %529 = vst.msk [vmem:[%s234_s28 + $0x10] sm:$0xff] %vm526_vm1, %v515_v48 }
 0x273   : > { %v517_v49 = vpop.xlane.xlu1 %516 }
 0x274   : > { %530 = vst.msk [vmem:[%s234_s28 + $0x18] sm:$0xff] %vm526_vm1, %v517_v49 }
 0x277   : > { %v519_v50 = vpop.xlane.xlu1 %518 }
 0x278   : > { %531 = vst.msk [vmem:[%s234_s28 + $0x20] sm:$0xff] %vm526_vm1, %v519_v50 }
 0x27b   : > { %v521_v51 = vpop.xlane.xlu1 %520 }
 0x27c   : > { %532 = vst.msk [vmem:[%s234_s28 + $0x28] sm:$0xff] %vm526_vm1, %v521_v51 }
 0x27f   : > { %v523_v52 = vpop.xlane.xlu1 %522 }
 0x280   : > { %533 = vst.msk [vmem:[%s234_s28 + $0x30] sm:$0xff] %vm526_vm1, %v523_v52 }
 0x283   : > { %v525_v53 = vpop.xlane.xlu1 %524 }
 0x284   : > { %534 = vst.msk [vmem:[%s234_s28 + $0x38] sm:$0xff] %vm526_vm1, %v525_v53 }
 0x285 PF: > { %s13_s14 = sadd.s32 1, %s753_s14   ;;  %s853_s12 = smov %s749_s13 }
 0x286   : > { %p10_p5 = scmp.ge.s32.totalorder %s13_s14, 4   ;;  %s854_s13 = smov %s856_s15 }
 0x288   :  { %12 = sbr.rel (!%p10_p5) target bundleno = 2 (0x2), region = 73 }

</bundles_post_ra>
